<compile_context>
chip_gen: v7x
topology: tpu7x:2x2x1
jax: 0.10.0
libtpu: 0.0.40
codegen_flags: <defaults>
</compile_context>

<pallas_src>
import jax
import jax.numpy as jnp
from jax import lax
from jax.experimental import pallas as pl
from jax.experimental.pallas import tpu as pltpu

B = 2      # batch
T = 16     # time frames
F = 29     # speech feature dim
C = 8      # condition dim
E = 32     # expression_dim
BN_EPS = 1e-5

# conv / fc channel sizes
_C1, _C2, _C3, _C4, _H = 32, 32, 64, 64, 128

# ---- packed weight slab layout (rows x 128 lanes, bf16) ----
_LANEW = 128


def _rup16(n):
    return -(-n // 16) * 16


_R1 = 3 * (F + C + 1)          # conv1: per tap [scaled speech W | cond W | bias row]
_R2 = 3 * _C1 + 1              # conv2 weight taps + bias row
_R3 = 3 * _C2 + 1
_R4 = 3 * _C3 + 1
_RF1 = _C4 + C + 1             # fc1: [flat W | cond W | bias row]
_RF2 = _H + 1                  # fc2: weight + bias row

_OFF1 = 0
_OFF2 = _OFF1 + _rup16(_R1)
_OFF3 = _OFF2 + _rup16(_R2)
_OFF4 = _OFF3 + _rup16(_R3)
_OFFF1 = _OFF4 + _rup16(_R4)
_OFFF2 = _OFFF1 + _rup16(_RF1)
_RTOT = _OFFF2 + _rup16(_RF2)


def _make_kernel(bsz):
    """Kernel closure over the (static) batch size."""

    def shift_down(a, s):       # rows at time t-d (zeros where out of range)
        return jnp.concatenate(
            [jnp.zeros((s,) + a.shape[1:], a.dtype), a[: a.shape[0] - s]], axis=0)

    def shift_up(a, s):         # rows at time t+d (zeros where out of range)
        return jnp.concatenate(
            [a[s:], jnp.zeros((s,) + a.shape[1:], a.dtype)], axis=0)

    def kernel(xc_ref, w_ref, out_ref):
        # xc: (T*B, F + C + 1) = [speech | condition | 1], time-major rows (t*B + b)
        xc = xc_ref[...]

        def dconv_relu(h, w, bias, step):
            # dilated stride-1 conv as ONE matmul: rows used downstream are exactly
            # the rows the strided conv would have produced.
            col = jnp.concatenate([shift_down(h, step), h, shift_up(h, step)], axis=-1)
            acc = jnp.dot(col, w, preferred_element_type=jnp.float32)
            if bias is not None:
                acc = acc + bias
            return jnp.maximum(acc, 0.0).astype(jnp.bfloat16)

        # conv1: BN scale/shift, condition channels and bias all folded into the slab
        h = dconv_relu(xc, w_ref[_OFF1:_OFF1 + _R1, 0:_C1], None, bsz)
        # conv2..conv4 (dilations 2, 4, 8 in time -> row shifts 2B, 4B, 8B)
        h = dconv_relu(h, w_ref[_OFF2:_OFF2 + 3 * _C1, 0:_C2],
                       w_ref[_OFF2 + 3 * _C1:_OFF2 + 3 * _C1 + 1, 0:_C2], 2 * bsz)
        h = dconv_relu(h, w_ref[_OFF3:_OFF3 + 3 * _C2, 0:_C3],
                       w_ref[_OFF3 + 3 * _C2:_OFF3 + 3 * _C2 + 1, 0:_C3], 4 * bsz)
        h = dconv_relu(h, w_ref[_OFF4:_OFF4 + 3 * _C3, 0:_C4],
                       w_ref[_OFF4 + 3 * _C3:_OFF4 + 3 * _C3 + 1, 0:_C4], 8 * bsz)

        # flatten == rows at t == 0; concat [flat | cond | 1] folds FC1 bias too
        flat = h[0:bsz, :]                                   # (B, 64)
        fc1_in = jnp.concatenate([flat, xc[0:bsz, F:]], axis=-1)   # (B, 64 + C + 1)
        z = jnp.tanh(jnp.dot(fc1_in, w_ref[_OFFF1:_OFFF1 + _RF1, 0:_H],
                             preferred_element_type=jnp.float32))  # (B, 128) f32
        y = (jnp.dot(z.astype(jnp.bfloat16), w_ref[_OFFF2:_OFFF2 + _H, 0:E],
                     preferred_element_type=jnp.float32)
             + w_ref[_OFFF2 + _H:_OFFF2 + _H + 1, 0:E])
        out_ref[...] = y.astype(out_ref.dtype)

    return kernel


def _pack_weights(params):
    """Fold eval-mode BN + biases and pack everything into one bf16 (rows, 128) slab."""
    scale = params['bn_gamma'] / jnp.sqrt(params['bn_var'] + BN_EPS)
    shift = params['bn_beta'] - params['bn_mean'] * scale

    w1 = params['w1']                             # (3, F + C, 32)
    w1x, w1c = w1[:, :F, :], w1[:, F:, :]
    b1 = params['b1'][0]
    taps = []
    for k in range(3):
        # ones-column weight: BN shift contribution of tap k (+ conv bias on center tap)
        bias_k = shift * jnp.sum(w1x[k], axis=0)
        if k == 1:
            bias_k = bias_k + b1
        taps.append(jnp.concatenate([scale * w1x[k], w1c[k], bias_k[None, :]], axis=0))
    blk1 = jnp.concatenate(taps, axis=0)          # (3*(F+C+1), 32)

    def conv_blk(w, b):                           # (3, Cin, Cout), (1, Cout)
        return jnp.concatenate([w.reshape(-1, w.shape[-1]), b], axis=0)

    blk2 = conv_blk(params['w2'], params['b2'])
    blk3 = conv_blk(params['w3'], params['b3'])
    blk4 = conv_blk(params['w4'], params['b4'])
    blkf1 = jnp.concatenate([params['wf1'], params['bf1']], axis=0)    # (64+C+1, 128)
    blkf2 = jnp.concatenate([params['wf2'], params['bf2']], axis=0)    # (129, E)

    def pad_blk(blk, rows):
        r, c = blk.shape
        return jnp.pad(blk, ((0, rows - r), (0, _LANEW - c)))

    slab = jnp.concatenate([
        pad_blk(blk1, _rup16(_R1)), pad_blk(blk2, _rup16(_R2)),
        pad_blk(blk3, _rup16(_R3)), pad_blk(blk4, _rup16(_R4)),
        pad_blk(blkf1, _rup16(_RF1)), pad_blk(blkf2, _rup16(_RF2))], axis=0)
    return slab.astype(jnp.bfloat16)              # (_RTOT, 128)


def init_params(key):
    ks = jax.random.split(key, 12)

    def w(k, shape, s=0.1):
        return jax.random.normal(k, shape, jnp.float32) * s

    return {
        # BatchNorm2d(1) parameters / running stats
        'bn_gamma': jnp.float32(1.1),
        'bn_beta': jnp.float32(0.05),
        'bn_mean': jnp.float32(0.2),
        'bn_var': jnp.float32(0.8),
        # conv weights stored as (kH, C_in, C_out), biases as (1, C_out)
        'w1': w(ks[0], (3, F + C, _C1)), 'b1': w(ks[1], (1, _C1)),
        'w2': w(ks[2], (3, _C1, _C2)),   'b2': w(ks[3], (1, _C2)),
        'w3': w(ks[4], (3, _C2, _C3)),   'b3': w(ks[5], (1, _C3)),
        'w4': w(ks[6], (3, _C3, _C4)),   'b4': w(ks[7], (1, _C4)),
        # FC weights stored as (in, out)
        'wf1': w(ks[8], (_C4 + C, _H)),  'bf1': w(ks[9], (1, _H)),
        'wf2': w(ks[10], (_H, E)),       'bf2': w(ks[11], (1, E)),
    }


@jax.jit
def speech_encoder_forward(speech_features, condition, params):
    bsz, t_frames, nfeat = speech_features.shape[:3]
    # time-major sublane-dense slab: row = t*B + b; raw features (BN folded in weights)
    x2d = jnp.transpose(speech_features[..., 0], (1, 0, 2)).reshape(t_frames * bsz, nfeat)
    cond1 = jnp.concatenate([condition, jnp.ones((bsz, 1), condition.dtype)], axis=-1)
    xc = jnp.concatenate([x2d, jnp.tile(cond1, (t_frames, 1))], axis=-1)   # (T*B, F+C+1)
    wslab = _pack_weights(params)

    vmem = pl.BlockSpec(memory_space=pltpu.MemorySpace.VMEM)
    return pl.pallas_call(
        _make_kernel(bsz),
        out_shape=jax.ShapeDtypeStruct((bsz, E), jnp.float32),
        in_specs=[vmem, vmem],
        out_specs=vmem,
    )(xc.astype(jnp.bfloat16), wslab)


def reference_forward(speech_features, condition, params):
    """Pure-JAX reference mirroring the PyTorch forward (eval-mode BN, f32)."""
    x = speech_features                                              # (B, T, F, 1)
    xn = ((x - params['bn_mean']) / jnp.sqrt(params['bn_var'] + BN_EPS)
          * params['bn_gamma'] + params['bn_beta'])[..., 0]          # (B, T, F)
    bsz, t, _ = xn.shape
    cond_t = jnp.broadcast_to(condition[:, None, :], (bsz, t, condition.shape[1]))
    h = jnp.concatenate([xn, cond_t], axis=-1)                       # (B, T, 37)
    h = jnp.transpose(h, (0, 2, 1))[..., None]                       # NCHW (B, 37, T, 1)
    for wk, bk in (('w1', 'b1'), ('w2', 'b2'), ('w3', 'b3'), ('w4', 'b4')):
        w_oihw = jnp.transpose(params[wk], (2, 1, 0))[..., None]     # (Cout, Cin, 3, 1)
        h = lax.conv_general_dilated(h, w_oihw, window_strides=(2, 1),
                                     padding=((1, 1), (0, 0)),
                                     dimension_numbers=('NCHW', 'OIHW', 'NCHW'))
        h = jnp.maximum(h + params[bk][0][None, :, None, None], 0.0)
    flat = h.reshape(bsz, -1)                                        # (B, 64)
    fc_in = jnp.concatenate([flat, condition], axis=-1)              # (B, 72)
    z = jnp.tanh(fc_in @ params['wf1'] + params['bf1'])
    return z @ params['wf2'] + params['bf2']


if __name__ == "__main__":
    key = jax.random.PRNGKey(0)
    kx, kc, kp = jax.random.split(key, 3)
    speech_features = jax.random.normal(kx, (B, T, F, 1), jnp.float32)
    condition = jax.random.normal(kc, (B, C), jnp.float32)
    params = init_params(kp)

    out = jax.block_until_ready(speech_encoder_forward(speech_features, condition, params))
    assert out.shape == (B, E)

    ref = reference_forward(speech_features, condition, params)
    # bf16 MXU operands (f32 accumulation) across 6 layers -> 3e-2 tolerance vs f32 ref
    if not jnp.allclose(out, ref, atol=3e-2, rtol=3e-2):
        raise AssertionError("Pallas kernel output does not match reference")
    print("KERNEL_OK")
</pallas_src>

<mosaic_0001>
module attributes {stable_mosaic.version = 11 : i64} {
  func.func @kernel(%arg0: memref<32x38xbf16, #tpu.memory_space<vmem>>, %arg1: memref<784x128xbf16, #tpu.memory_space<vmem>>, %arg2: memref<2x32xf32, #tpu.memory_space<vmem>>) attributes {dimension_semantics = [], scalar_prefetch = 0 : i64, scratch_operands = 0 : i64, tpu.core_type = #tpu.core_type<tc>} {
    %c0 = arith.constant 0 : index
    %c0_0 = arith.constant 0 : index
    %0 = vector.load %arg0[%c0, %c0_0] : memref<32x38xbf16, #tpu.memory_space<vmem>>, vector<32x38xbf16>
    %c0_1 = arith.constant 0 : index
    %c0_2 = arith.constant 0 : index
    %1 = vector.load %arg1[%c0_1, %c0_2] : memref<784x128xbf16, #tpu.memory_space<vmem>>, vector<114x32xbf16>
    %cst = arith.constant 0.000000e+00 : bf16
    %2 = vector.broadcast %cst : bf16 to vector<2x38xbf16>
    %3 = vector.extract_strided_slice %0 {offsets = [0, 0], sizes = [30, 38], strides = [1, 1]} : vector<32x38xbf16> to vector<30x38xbf16>
    %4 = tpu.concatenate %2, %3 in 0 : vector<2x38xbf16>, vector<30x38xbf16> -> vector<32x38xbf16>
    %5 = vector.extract_strided_slice %0 {offsets = [2, 0], sizes = [30, 38], strides = [1, 1]} : vector<32x38xbf16> to vector<30x38xbf16>
    %cst_3 = arith.constant 0.000000e+00 : bf16
    %6 = vector.broadcast %cst_3 : bf16 to vector<2x38xbf16>
    %7 = tpu.concatenate %5, %6 in 0 : vector<30x38xbf16>, vector<2x38xbf16> -> vector<32x38xbf16>
    %8 = tpu.concatenate %4, %0, %7 in 1 : vector<32x38xbf16>, vector<32x38xbf16>, vector<32x38xbf16> -> vector<32x114xbf16>
    %cst_4 = arith.constant dense<0.000000e+00> : vector<32x32xf32>
    %9 = tpu.matmul %8, %1, %cst_4 {dimension_numbers = #tpu.dot_dimension_numbers<[1], [0], [0], [1], [0, 0, 1, 1], [], []>} : vector<32x114xbf16>, vector<114x32xbf16>, vector<32x32xf32> -> vector<32x32xf32>
    %cst_5 = arith.constant 0.000000e+00 : f32
    %10 = vector.broadcast %cst_5 : f32 to vector<32x32xf32>
    %11 = arith.maximumf %9, %10 : vector<32x32xf32>
    %12 = arith.truncf %11 : vector<32x32xf32> to vector<32x32xbf16>
    %c128 = arith.constant 128 : index
    %c0_6 = arith.constant 0 : index
    %13 = vector.load %arg1[%c128, %c0_6] : memref<784x128xbf16, #tpu.memory_space<vmem>>, vector<96x32xbf16>
    %c224 = arith.constant 224 : index
    %c0_7 = arith.constant 0 : index
    %14 = vector.load %arg1[%c224, %c0_7] : memref<784x128xbf16, #tpu.memory_space<vmem>>, vector<1x32xbf16>
    %cst_8 = arith.constant 0.000000e+00 : bf16
    %15 = vector.broadcast %cst_8 : bf16 to vector<4x32xbf16>
    %16 = vector.extract_strided_slice %12 {offsets = [0, 0], sizes = [28, 32], strides = [1, 1]} : vector<32x32xbf16> to vector<28x32xbf16>
    %17 = tpu.concatenate %15, %16 in 0 : vector<4x32xbf16>, vector<28x32xbf16> -> vector<32x32xbf16>
    %18 = vector.extract_strided_slice %12 {offsets = [4, 0], sizes = [28, 32], strides = [1, 1]} : vector<32x32xbf16> to vector<28x32xbf16>
    %cst_9 = arith.constant 0.000000e+00 : bf16
    %19 = vector.broadcast %cst_9 : bf16 to vector<4x32xbf16>
    %20 = tpu.concatenate %18, %19 in 0 : vector<28x32xbf16>, vector<4x32xbf16> -> vector<32x32xbf16>
    %21 = tpu.concatenate %17, %12, %20 in 1 : vector<32x32xbf16>, vector<32x32xbf16>, vector<32x32xbf16> -> vector<32x96xbf16>
    %cst_10 = arith.constant dense<0.000000e+00> : vector<32x32xf32>
    %22 = tpu.matmul %21, %13, %cst_10 {dimension_numbers = #tpu.dot_dimension_numbers<[1], [0], [0], [1], [0, 0, 1, 1], [], []>} : vector<32x96xbf16>, vector<96x32xbf16>, vector<32x32xf32> -> vector<32x32xf32>
    %23 = arith.extf %14 : vector<1x32xbf16> to vector<1x32xf32>
    %24 = vector.broadcast %23 : vector<1x32xf32> to vector<32x32xf32>
    %25 = arith.addf %22, %24 : vector<32x32xf32>
    %cst_11 = arith.constant 0.000000e+00 : f32
    %26 = vector.broadcast %cst_11 : f32 to vector<32x32xf32>
    %27 = arith.maximumf %25, %26 : vector<32x32xf32>
    %28 = arith.truncf %27 : vector<32x32xf32> to vector<32x32xbf16>
    %c240 = arith.constant 240 : index
    %c0_12 = arith.constant 0 : index
    %29 = vector.load %arg1[%c240, %c0_12] : memref<784x128xbf16, #tpu.memory_space<vmem>>, vector<96x64xbf16>
    %c336 = arith.constant 336 : index
    %c0_13 = arith.constant 0 : index
    %30 = vector.load %arg1[%c336, %c0_13] : memref<784x128xbf16, #tpu.memory_space<vmem>>, vector<1x64xbf16>
    %cst_14 = arith.constant 0.000000e+00 : bf16
    %31 = vector.broadcast %cst_14 : bf16 to vector<8x32xbf16>
    %32 = vector.extract_strided_slice %28 {offsets = [0, 0], sizes = [24, 32], strides = [1, 1]} : vector<32x32xbf16> to vector<24x32xbf16>
    %33 = tpu.concatenate %31, %32 in 0 : vector<8x32xbf16>, vector<24x32xbf16> -> vector<32x32xbf16>
    %34 = vector.extract_strided_slice %28 {offsets = [8, 0], sizes = [24, 32], strides = [1, 1]} : vector<32x32xbf16> to vector<24x32xbf16>
    %cst_15 = arith.constant 0.000000e+00 : bf16
    %35 = vector.broadcast %cst_15 : bf16 to vector<8x32xbf16>
    %36 = tpu.concatenate %34, %35 in 0 : vector<24x32xbf16>, vector<8x32xbf16> -> vector<32x32xbf16>
    %37 = tpu.concatenate %33, %28, %36 in 1 : vector<32x32xbf16>, vector<32x32xbf16>, vector<32x32xbf16> -> vector<32x96xbf16>
    %cst_16 = arith.constant dense<0.000000e+00> : vector<32x64xf32>
    %38 = tpu.matmul %37, %29, %cst_16 {dimension_numbers = #tpu.dot_dimension_numbers<[1], [0], [0], [1], [0, 0, 1, 1], [], []>} : vector<32x96xbf16>, vector<96x64xbf16>, vector<32x64xf32> -> vector<32x64xf32>
    %39 = arith.extf %30 : vector<1x64xbf16> to vector<1x64xf32>
    %40 = vector.broadcast %39 : vector<1x64xf32> to vector<32x64xf32>
    %41 = arith.addf %38, %40 : vector<32x64xf32>
    %cst_17 = arith.constant 0.000000e+00 : f32
    %42 = vector.broadcast %cst_17 : f32 to vector<32x64xf32>
    %43 = arith.maximumf %41, %42 : vector<32x64xf32>
    %44 = arith.truncf %43 : vector<32x64xf32> to vector<32x64xbf16>
    %c352 = arith.constant 352 : index
    %c0_18 = arith.constant 0 : index
    %45 = vector.load %arg1[%c352, %c0_18] : memref<784x128xbf16, #tpu.memory_space<vmem>>, vector<192x64xbf16>
    %c544 = arith.constant 544 : index
    %c0_19 = arith.constant 0 : index
    %46 = vector.load %arg1[%c544, %c0_19] : memref<784x128xbf16, #tpu.memory_space<vmem>>, vector<1x64xbf16>
    %cst_20 = arith.constant 0.000000e+00 : bf16
    %47 = vector.broadcast %cst_20 : bf16 to vector<16x64xbf16>
    %48 = vector.extract_strided_slice %44 {offsets = [0, 0], sizes = [16, 64], strides = [1, 1]} : vector<32x64xbf16> to vector<16x64xbf16>
    %49 = tpu.concatenate %47, %48 in 0 : vector<16x64xbf16>, vector<16x64xbf16> -> vector<32x64xbf16>
    %50 = vector.extract_strided_slice %44 {offsets = [16, 0], sizes = [16, 64], strides = [1, 1]} : vector<32x64xbf16> to vector<16x64xbf16>
    %cst_21 = arith.constant 0.000000e+00 : bf16
    %51 = vector.broadcast %cst_21 : bf16 to vector<16x64xbf16>
    %52 = tpu.concatenate %50, %51 in 0 : vector<16x64xbf16>, vector<16x64xbf16> -> vector<32x64xbf16>
    %53 = tpu.concatenate %49, %44, %52 in 1 : vector<32x64xbf16>, vector<32x64xbf16>, vector<32x64xbf16> -> vector<32x192xbf16>
    %cst_22 = arith.constant dense<0.000000e+00> : vector<32x64xf32>
    %54 = tpu.matmul %53, %45, %cst_22 {dimension_numbers = #tpu.dot_dimension_numbers<[1], [0], [0], [1], [0, 0, 1, 1], [], []>} : vector<32x192xbf16>, vector<192x64xbf16>, vector<32x64xf32> -> vector<32x64xf32>
    %55 = arith.extf %46 : vector<1x64xbf16> to vector<1x64xf32>
    %56 = vector.broadcast %55 : vector<1x64xf32> to vector<32x64xf32>
    %57 = arith.addf %54, %56 : vector<32x64xf32>
    %cst_23 = arith.constant 0.000000e+00 : f32
    %58 = vector.broadcast %cst_23 : f32 to vector<32x64xf32>
    %59 = arith.maximumf %57, %58 : vector<32x64xf32>
    %60 = arith.truncf %59 : vector<32x64xf32> to vector<32x64xbf16>
    %61 = vector.extract_strided_slice %60 {offsets = [0, 0], sizes = [2, 64], strides = [1, 1]} : vector<32x64xbf16> to vector<2x64xbf16>
    %62 = vector.extract_strided_slice %0 {offsets = [0, 29], sizes = [2, 9], strides = [1, 1]} : vector<32x38xbf16> to vector<2x9xbf16>
    %63 = tpu.concatenate %61, %62 in 1 : vector<2x64xbf16>, vector<2x9xbf16> -> vector<2x73xbf16>
    %c560 = arith.constant 560 : index
    %c0_24 = arith.constant 0 : index
    %64 = vector.load %arg1[%c560, %c0_24] : memref<784x128xbf16, #tpu.memory_space<vmem>>, vector<73x128xbf16>
    %cst_25 = arith.constant dense<0.000000e+00> : vector<2x128xf32>
    %65 = tpu.matmul %63, %64, %cst_25 {dimension_numbers = #tpu.dot_dimension_numbers<[1], [0], [0], [1], [0, 0, 1, 1], [], []>} : vector<2x73xbf16>, vector<73x128xbf16>, vector<2x128xf32> -> vector<2x128xf32>
    %66 = math.tanh %65 : vector<2x128xf32>
    %67 = arith.truncf %66 : vector<2x128xf32> to vector<2x128xbf16>
    %c640 = arith.constant 640 : index
    %c0_26 = arith.constant 0 : index
    %68 = vector.load %arg1[%c640, %c0_26] : memref<784x128xbf16, #tpu.memory_space<vmem>>, vector<128x32xbf16>
    %cst_27 = arith.constant dense<0.000000e+00> : vector<2x32xf32>
    %69 = tpu.matmul %67, %68, %cst_27 {dimension_numbers = #tpu.dot_dimension_numbers<[1], [0], [0], [1], [0, 0, 1, 1], [], []>} : vector<2x128xbf16>, vector<128x32xbf16>, vector<2x32xf32> -> vector<2x32xf32>
    %c768 = arith.constant 768 : index
    %c0_28 = arith.constant 0 : index
    %70 = vector.load %arg1[%c768, %c0_28] : memref<784x128xbf16, #tpu.memory_space<vmem>>, vector<1x32xbf16>
    %71 = arith.extf %70 : vector<1x32xbf16> to vector<1x32xf32>
    %72 = vector.broadcast %71 : vector<1x32xf32> to vector<2x32xf32>
    %73 = arith.addf %69, %72 : vector<2x32xf32>
    %c0_29 = arith.constant 0 : index
    %c0_30 = arith.constant 0 : index
    %74 = vector.load %arg2[%c0_29, %c0_30] : memref<2x32xf32, #tpu.memory_space<vmem>>, vector<2x32xf32>
    tpu.vector_store %arg2[%c0_29, %c0_30], %73 {strides = array<i32>} : memref<2x32xf32, #tpu.memory_space<vmem>>, vector<2x32xf32>,
    return
  }
}

</mosaic_0001>

<bundles_post_ra>
// kernel: speech_encoder_forward.1
= control target key start
LH: loop header
LB: loop body
LE: loop exit
PB: predicated region body
PF: predicated region fallthrough
CT: control target
= control target key end

     0   :  { %vm50_vm0 = vcmask 1046528   ;;  %s1139_s17 = smov 38   ;;  %vm42_vm1 = vcmask 1040384   ;;  %s1409_s0 = inlined_call_operand.vmem [shape: bf16[32,38], index: 0, kind: input, shape index: {}]   ;;  %s1410_s1 = inlined_call_operand.vmem [shape: bf16[784,128], index: 1, kind: input, shape index: {}]   ;;  %s1411_s2 = inlined_call_operand.hbm [shape: f32[2,32], index: 2, kind: output, shape index: {}]  }
   0x1   :  { %v1167_v0 = vld [vmem:[%s1409_s0] sm:$0xf]  ;;  %v14_v1 = vld [vmem:[%s1409_s0 + $0x4] sm:$0xf]  ;;  %v1066_v2 = vld [vmem:[%s1409_s0 + $0x8] sm:$0xff]   ;;  %s1140_s0 = smov 76  }
   0x2   :  { %v869_v3 = vcombine.low %v1167_v0, %v14_v1  ;;  %v52_v4 = vrot.slane %v1066_v2, 1  ;;  %v1067_v5 = vld [vmem:[%s1410_s1] sm:$0xff]   ;;  %v1068_v7 = vld [vmem:[%s1410_s1 + $0x8] sm:$0xff]   ;;  %v1069_v9 = vld [vmem:[%s1410_s1 + $0x10] sm:$0xff]   ;;  %v44_v15 = vrot.slane %v1066_v2, 7 }
   0x3   :  { %968 = vmatprep.subr.bf16.mxu0 %v1067_v5  ;;  %v1074_v13 = vld [vmem:[%s1410_s1 + $0x38] ss:$0 sps:$4 sm:$0x11]   ;;  %v1071_v17 = vld [vmem:[%s1410_s1 + $0x20] sm:$0xff]   ;;  %v1072_v19 = vld [vmem:[%s1410_s1 + $0x28] sm:$0xff]  }
   0x4   :  { %57 = vrot.lane.b32.xlu0 %v869_v3, %s1139_s17  ;;  %v51_v6 = vrot.slane %v869_v3, 1  ;;  %969 = vmatpush3.bf16.msra.mxu0 %v1067_v5  ;;  %v56_v10 = vsel %vm50_vm0, %v52_v4, 0  ;;  %v43_v11 = vrot.slane %v869_v3, 7  ;;  %v1070_v14 = vld [vmem:[%s1410_s1 + $0x18] sm:$0xff]   ;;  %v128_v16 = vsel %vm42_vm1, %v1074_v13, 0  ;;  %v1073_v20 = vld [vmem:[%s1410_s1 + $0x30] sm:$0xff]  }
   0x5   :  { %970 = vmatprep.subr.bf16.mxu0 %v1068_v7 }
   0x6   :  { %v53_v8 = vsel %vm50_vm0, %v51_v6, %v52_v4  ;;  %v49_v12 = vsel %vm42_vm1, 0, %v43_v11  ;;  %v45_v18 = vsel %vm42_vm1, %v43_v11, %v44_v15 }
   0x7   :  { %62 = vrot.lane.b32.xlu1 %v53_v8, %s1140_s0 }
   0x8   :  { %59 = vrot.lane.b32.xlu0 %v1066_v2, %s1139_s17  ;;  %971 = vmatpush3.bf16.msra.mxu0 %v1068_v7 }
   0x9   :  { %972 = vmatprep.subr.bf16.mxu0 %v1069_v9 }
   0xb   :  { %64 = vrot.lane.b32.xlu1 %v56_v10, %s1140_s0 }
   0xc   :  { %973 = vmatpush3.bf16.msra.mxu0 %v1069_v9 }
   0xd   :  { %974 = vmatprep.subr.bf16.mxu0 %v1070_v14 }
  0x10   :  { %975 = vmatpush3.bf16.msra.mxu0 %v1070_v14 }
  0x11   :  { %976 = vmatprep.subr.bf16.mxu0 %v1071_v17 }
  0x14   :  { %977 = vmatpush3.bf16.msra.mxu0 %v1071_v17 }
  0x15   :  { %978 = vmatprep.subr.bf16.mxu0 %v1072_v19 }
  0x18   :  { %979 = vmatpush3.bf16.msra.mxu0 %v1072_v19 }
  0x19   :  { %980 = vmatprep.subr.bf16.mxu0 %v1073_v20 }
  0x1c   :  { %981 = vmatpush3.bf16.msra.mxu0 %v1073_v20 }
  0x1d   :  { %1054 = vmatprep.subr.msk.bf16.mxu0 %vm42_vm1, %v1074_v13 }
  0x20   :  { %983 = vmatpush3.bf16.msra.mxu0 %v128_v16 }
  0x21   :  { %7 = vsyncpa [#allocation3], 0  ;;  %vm66_vm2 = vcmask 310272   ;;  %vm72_vm3 = vcmask 621568   ;;  %vm122_vm4 = vcmask 932864   ;;  %v1075_v29 = vld [vmem:[%s1410_s1 + $0x40] sm:$0xff]   ;;  %v235_v3 = vlaneseq }
  0x22   :  { %v1076_v30 = vld [vmem:[%s1410_s1 + $0x48] sm:$0xff]   ;;  %988 = vmatprep.subr.bf16.mxu1 %v1075_v29  ;;  %v1077_v31 = vld [vmem:[%s1410_s1 + $0x50] sm:$0xff]   ;;  %v1078_v32 = vld [vmem:[%s1410_s1 + $0x58] sm:$0xff]   ;;  %vm207_vm5 = vcmask 1045504   ;;  %s1141_s16 = smov 32   ;;  %vm200_vm6 = vcmask 1041408  }
  0x23   :  { %989 = vmatpush3.bf16.msra.mxu1 %v1075_v29  ;;  %v1079_v33 = vld [vmem:[%s1410_s1 + $0x60] sm:$0xff]   ;;  %v1080_v34 = vld [vmem:[%s1410_s1 + $0x68] sm:$0xff]   ;;  %s1142_s17 = smov 64   ;;  %vm223_vm7 = vcmask 261120   ;;  %vm229_vm8 = vcmask 523264   ;;  %vm275_vm9 = vcmask 785408  }
  0x24   :  { %990 = vmatprep.subr.bf16.mxu1 %v1076_v30  ;;  %v1081_v61 = vld [vmem:[%s1410_s1 + $0x78] sm:$0xff]   ;;  %v1082_v62 = vld [vmem:[%s1410_s1 + $0x80] sm:$0xff]   ;;  %v1083_v63 = vld [vmem:[%s1410_s1 + $0x88] sm:$0xff]   ;;  %v236_v4 = vshrl.u32 %v235_v3, 7  ;;  %vm350_vm10 = vcmask 1043456   ;;  %s1145_s3 = smov 35  }
  0x25   :  { %v1084_v1 = vld [vmem:[%s1410_s1 + $0x90] sm:$0xff]   ;;  %v1085_v2 = vld [vmem:[%s1410_s1 + $0x98] sm:$0xff]   ;;  %v1086_v9 = vld [vmem:[%s1410_s1 + $0xa0] sm:$0xff]   ;;  %vm695_vm12 = vcmask 1044480   ;;  %vm1147_vm13 = vmmov 0   ;;  %vm692_vm14 = vcmask 596992  }
  0x26   :  { %v197_v5 = vld [vmem:[%s1410_s1 + $0x70] sm:$0x1]  ;;  %v1252_v7 = vsub.s32 0, %v236_v4  ;;  %v1144_v4 = vmov 0.0   ;;  %vm910_vm11 = vmneg %vm229_vm8  ;;  %vm853_vm15 = vcmask 254976  }
  0x27   :  { %991 = vmatpush3.bf16.msra.mxu1 %v1076_v30  ;;  %v234_v6 = vunpack.c.l.bf16 %v197_v5 }
  0x28   :  { %992 = vmatprep.subr.bf16.mxu1 %v1077_v31 }
  0x29   :  { %v238_v8 = vrot.slane %v234_v6, %v1252_v7  ;;  %v1101_v6 = vld [vmem:[%s1410_s1 + $0x120] sm:$0xff]  }
  0x2b   :  { %993 = vmatpush3.bf16.msra.mxu1 %v1077_v31 }
  0x2c   :  { %994 = vmatprep.subr.bf16.mxu1 %v1078_v32 }
  0x2f   :  { %995 = vmatpush3.bf16.msra.mxu1 %v1078_v32 }
  0x30   :  { %996 = vmatprep.subr.bf16.mxu1 %v1079_v33 }
  0x33   :  { %997 = vmatpush3.bf16.msra.mxu1 %v1079_v33 }
  0x34   :  { %998 = vmatprep.subr.bf16.mxu1 %v1080_v34 }
  0x37   :  { %999 = vmatpush3.bf16.msra.mxu1 %v1080_v34 }
  0x38   :  { %1004 = vmatprep.subr.bf16.mxu1 %v1081_v61 }
  0x76   :  { %v58_v21 = vpop.permute.xlu0 %57 }
  0x77   :  { %v68_v22 = vsel %vm66_vm2, %v49_v12, %v58_v21 }
  0x79   :  { %v63_v23 = vpop.permute.xlu1 %62 }
  0x7a   :  { %v74_v24 = vsel %vm72_vm3, %v68_v22, %v63_v23  ;;  %v60_v25 = vpop.permute.xlu0 %59 }
  0x7b   :  { %984 = vmatprep.mubr.msk.bf16.mxu0 %vm122_vm4, %v74_v24  ;;  %v71_v26 = vsel %vm66_vm2, %v45_v18, %v60_v25 }
  0x7d   :  { %v65_v27 = vpop.permute.xlu1 %64 }
  0x7e   :  { %v76_v28 = vsel %vm72_vm3, %v71_v26, %v65_v27 }
  0x7f   :  { %985 = vmatmul.mubr.msk.bf16.vlgmr.msra.gmra.mrb[0].mxu0 %vm122_vm4, %v76_v28 }
 0x152   :  { %v986_v35 = vpop.f32.mrb[0].mxu0 }
 0x153   :  { %v164_v36 = vpop.f32.mrb[1].mxu0  ;;  %v181_v38 = vmax.f32 %v986_v35, 0.0 }
 0x154   :  { %v987_v37 = vpop.f32.mrb[2].mxu0  ;;  %v179_v41 = vmax.f32 %v164_v36, 0.0 }
 0x155   :  { %v182_v39 = vmax.f32 %v987_v37, 0.0  ;;  %v167_v40 = vpop.f32.mrb[3].mxu0  ;;  %v1087_v37 = vld [vmem:[%s1410_s1 + $0xb0] sm:$0xff]  }
 0x156   :  { %v180_v42 = vmax.f32 %v167_v40, 0.0  ;;  %v1089_v40 = vld [vmem:[%s1410_s1 + $0xc0] sm:$0xff]  }
 0x157   :  { %v184_v43 = vpack.c.bf16 %v182_v39, %v181_v38  ;;  %v1143_v38 = vmov 0   ;;  %v1088_v39 = vld [vmem:[%s1410_s1 + $0xb8] sm:$0xff]  }
 0x158   :  { %v183_v44 = vpack.c.bf16 %v180_v42, %v179_v41  ;;  %597 = vmatprep.subr.bf16.mxu0 %v1143_v38  ;;  %v1090_v41 = vld [vmem:[%s1410_s1 + $0xc8] sm:$0xff]   ;;  %v1091_v42 = vld [vmem:[%s1410_s1 + $0xd0] sm:$0xff]  }
 0x159   :  { %v202_v45 = vrot.slane %v184_v43, 6  ;;  %216 = vrot.lane.b32.xlu1 %v184_v43, %s1141_s16  ;;  %v209_v46 = vrot.slane %v184_v43, 2  ;;  %598 = vmatpush1.bf16.msra.mxu0 %v1087_v37  ;;  %v1092_v43 = vld [vmem:[%s1410_s1 + $0xd8] sm:$0xff]   ;;  %v1106_v37 = vld [vmem:[%s1410_s1 + $0x148] sm:$0xff]  }
 0x15a   :  { %v201_v47 = vrot.slane %v183_v44, 6  ;;  %214 = vrot.lane.b32.xlu0 %v183_v44, %s1141_s16  ;;  %v208_v48 = vrot.slane %v183_v44, 2  ;;  %599 = vmatprep.subr.bf16.mxu0 %v1143_v38  ;;  %v1093_v44 = vld [vmem:[%s1410_s1 + $0xe0] sm:$0xff]  }
 0x15b   :  { %v213_v49 = vsel %vm207_vm5, %v209_v46, 0 }
 0x15c   :  { %v210_v50 = vsel %vm207_vm5, %v208_v48, %v209_v46  ;;  %v203_v51 = vsel %vm200_vm6, %v201_v47, %v202_v45  ;;  %v206_v54 = vsel %vm200_vm6, 0, %v201_v47  ;;  %v1094_v45 = vld [vmem:[%s1410_s1 + $0xe8] sm:$0xff]   ;;  %v1095_v46 = vld [vmem:[%s1410_s1 + $0xf0] sm:$0xff]   ;;  %v1096_v47 = vld [vmem:[%s1410_s1 + $0xf8] sm:$0xff]  }
 0x15d   :  { %221 = vrot.lane.b32.xlu1 %v213_v49, %s1142_s17  ;;  %600 = vmatpush1.bf16.msra.mxu0 %v1088_v39  ;;  %v1097_v48 = vld [vmem:[%s1410_s1 + $0x100] sm:$0xff]   ;;  %v1098_v49 = vld [vmem:[%s1410_s1 + $0x108] sm:$0xff]   ;;  %v1108_v39 = vld [vmem:[%s1410_s1 + $0x158] sm:$0xff]  }
 0x15e   :  { %219 = vrot.lane.b32.xlu0 %v210_v50, %s1142_s17  ;;  %601 = vmatprep.subr.bf16.mxu0 %v1143_v38  ;;  %v347_v50 = vld [vmem:[%s1410_s1 + $0xa8] sm:$0x1] }
 0x161   :  { %602 = vmatpush1.bf16.msra.mxu0 %v1089_v40  ;;  %v1109_v40 = vld [vmem:[%s1410_s1 + $0x160] sm:$0xff]  }
 0x162   :  { %603 = vmatprep.subr.bf16.mxu0 %v1143_v38 }
 0x165   :  { %604 = vmatpush1.bf16.msra.mxu0 %v1090_v41  ;;  %v1110_v41 = vld [vmem:[%s1410_s1 + $0x168] sm:$0xff]  }
 0x166   :  { %605 = vmatprep.subr.bf16.mxu0 %v1143_v38 }
 0x169   :  { %606 = vmatpush1.bf16.msra.mxu0 %v1091_v42  ;;  %v1111_v42 = vld [vmem:[%s1410_s1 + $0x170] sm:$0xff]  }
 0x16a   :  { %607 = vmatprep.subr.bf16.mxu0 %v1143_v38 }
 0x16d   :  { %608 = vmatpush1.bf16.msra.mxu0 %v1092_v43  ;;  %v1112_v43 = vld [vmem:[%s1410_s1 + $0x178] sm:$0xff]  }
 0x16e   :  { %609 = vmatprep.subr.bf16.mxu0 %v1143_v38 }
 0x171   :  { %610 = vmatpush1.bf16.msra.mxu0 %v1093_v44 }
 0x172   :  { %611 = vmatprep.subr.bf16.mxu0 %v1143_v38 }
 0x175   :  { %612 = vmatpush1.bf16.msra.mxu0 %v1094_v45 }
 0x176   :  { %613 = vmatprep.subr.bf16.mxu0 %v1143_v38 }
 0x179   :  { %614 = vmatpush1.bf16.msra.mxu0 %v1095_v46 }
 0x17a   :  { %615 = vmatprep.subr.bf16.mxu0 %v1143_v38 }
 0x17d   :  { %616 = vmatpush1.bf16.msra.mxu0 %v1096_v47 }
 0x17e   :  { %617 = vmatprep.subr.bf16.mxu0 %v1143_v38 }
 0x181   :  { %618 = vmatpush1.bf16.msra.mxu0 %v1097_v48 }
 0x182   :  { %619 = vmatprep.subr.bf16.mxu0 %v1143_v38 }
 0x185   :  { %620 = vmatpush1.bf16.msra.mxu0 %v1098_v49 }
 0x1cb   :  { %v217_v52 = vpop.permute.xlu1 %216 }
 0x1cc   :  { %v215_v53 = vpop.permute.xlu0 %214  ;;  %v228_v58 = vsel %vm223_vm7, %v203_v51, %v217_v52  ;;  %v377_v51 = vunpack.c.l.bf16 %v347_v50  ;;  %v759_v50 = vld [vmem:[%s1410_s1 + $0x180] sm:$0x1] }
 0x1cd   :  { %v225_v56 = vsel %vm223_vm7, %v206_v54, %v215_v53 }
 0x1ce   :  { %v381_v52 = vrot.slane %v377_v51, %v1252_v7  ;;  %v760_v51 = vunpack.c.l.bf16 %v759_v50 }
 0x1cf   :  { %v222_v55 = vpop.permute.xlu1 %221 }
 0x1d0   :  { %v220_v57 = vpop.permute.xlu0 %219  ;;  %v233_v60 = vsel %vm229_vm8, %v228_v58, %v222_v55 }
 0x1d1   :  { %v231_v59 = vsel %vm229_vm8, %v225_v56, %v220_v57 }
 0x1d2   :  { %1000 = vmatprep.mubr.msk.bf16.mxu1 %vm275_vm9, %v231_v59 }
 0x1d3   :  { %1001 = vmatmul.mubr.msk.bf16.vlgmr.msra.gmra.mrb[0].mxu1 %vm275_vm9, %v233_v60 }
 0x1d4   :  { %1005 = vmatpush3.bf16.msra.mxu1 %v1081_v61 }
 0x1d5   :  { %1006 = vmatprep.subr.bf16.mxu1 %v1082_v62 }
 0x1d8   :  { %1007 = vmatpush3.bf16.msra.mxu1 %v1082_v62 }
 0x1d9   :  { %1008 = vmatprep.subr.bf16.mxu1 %v1083_v63 }
 0x1dc   :  { %1009 = vmatpush3.bf16.msra.mxu1 %v1083_v63  ;;  %v912_v63 = vcombine.low %v1167_v0, %v1167_v0  ;;  %v1102_v0 = vld [vmem:[%s1410_s1 + $0x128] sm:$0xff]  }
 0x1dd   :  { %1010 = vmatprep.subr.bf16.mxu1 %v1084_v1 }
 0x1e0   :  { %1011 = vmatpush3.bf16.msra.mxu1 %v1084_v1  ;;  %v1100_v1 = vld [vmem:[%s1410_s1 + $0x118] sm:$0xff]  }
 0x1e1   :  { %1012 = vmatprep.subr.bf16.mxu1 %v1085_v2 }
 0x1e4   :  { %1013 = vmatpush3.bf16.msra.mxu1 %v1085_v2 }
 0x1e5   :  { %1014 = vmatprep.subr.bf16.mxu1 %v1086_v9 }
 0x1e8   :  { %1015 = vmatpush3.bf16.msra.mxu1 %v1086_v9 }
 0x1e9   :  { %1020 = vmatprep.subr.bf16.mxu1 %v1144_v4 }
 0x2a6   :  { %v1002_v10 = vpop.f32.mrb[0].mxu1 }
 0x2a7   :  { %v323_v11 = vadd.f32 %v1002_v10, %v238_v8  ;;  %v314_v12 = vpop.f32.mrb[1].mxu1 }
 0x2a8   :  { %v315_v13 = vadd.f32 %v314_v12, %v238_v8  ;;  %v1003_v14 = vpop.f32.mrb[2].mxu1  ;;  %v1103_v12 = vld [vmem:[%s1410_s1 + $0x130] sm:$0xff]  }
 0x2a9   :  { %v326_v15 = vadd.f32 %v1003_v14, %v238_v8  ;;  %v317_v16 = vpop.f32.mrb[3].mxu1  ;;  %v331_v18 = vmax.f32 %v323_v11, 0.0  ;;  %v1146_v14 = vmov 65535  }
 0x2aa   :  { %v318_v17 = vadd.f32 %v317_v16, %v238_v8  ;;  %v329_v20 = vmax.f32 %v315_v13, 0.0  ;;  %v1104_v13 = vld [vmem:[%s1410_s1 + $0x138] sm:$0x1f]  }
 0x2ab   :  { %v332_v19 = vmax.f32 %v326_v15, 0.0  ;;  %v696_v15 = vsel %vm350_vm10, 4294967295, %v1146_v14 }
 0x2ac   :  { %v330_v21 = vmax.f32 %v318_v17, 0.0  ;;  %v697_v16 = vsel %vm695_vm12, %v696_v15, 0 }
 0x2ad   :  { %v334_v22 = vpack.c.bf16 %v332_v19, %v331_v18  ;;  %v699_v17 = vand.u32 %v1104_v13, %v697_v16  ;;  %v501_v18 = vld [vmem:[%s1410_s1 + $0x110] sm:$0x1] }
 0x2ae   :  { %v333_v23 = vpack.c.bf16 %v330_v21, %v329_v20  ;;  %v515_v19 = vunpack.c.l.bf16 %v501_v18 }
 0x2af   :  { %361 = vrot.lane.b32.xlu1 %v334_v22, %s1141_s16  ;;  %v352_v24 = vrot.slane %v334_v22, 4 }
 0x2b0   :  { %v351_v25 = vrot.slane %v333_v23, 4  ;;  %359 = vrot.lane.b32.xlu0 %v333_v23, %s1141_s16  ;;  %v519_v20 = vrot.slane %v515_v19, %v1252_v7 }
 0x2b1   :  { %v358_v26 = vsel %vm350_vm10, %v352_v24, 0 }
 0x2b2   :  { %v353_v27 = vsel %vm350_vm10, %v351_v25, %v352_v24  ;;  %v356_v30 = vsel %vm350_vm10, 0, %v351_v25 }
 0x2b3   :  { %366 = vrot.lane.b32.xlu1 %v358_v26, %s1142_s17 }
 0x2b4   :  { %364 = vrot.lane.b32.xlu0 %v353_v27, %s1142_s17 }
 0x2b7   :  { %648 = vrot.lane.b32.xlu1 %v912_v63, %s1145_s3  ;;  %s1148_s3 = smov [#allocation2]  }
 0x2b8   :  { %s861_s4 = sshll.u32 %s1148_s3, 4  ;;  %s862_s4 = int_to_ptr.vmem [resolvable:$true] %s861_s4 }
 0x2b9   :  { %s1115_s5 = scalar_lea.vmem %s862_s4, 32  ;;  %p1120_p1 = scmp.lt.s32.totalorder %s862_s4, %s862_s4 }
 0x2ba   :  { %p1116_p0 = scmp.ne.s32.totalorder %s862_s4, %s1115_s5  ;;  %p1121_p2 = scmp.lt.s32.totalorder %s1115_s5, %s1115_s5 }
 0x2bc   :  { %p1122_p3 = por %p1121_p2, %p1120_p1 }
 0x2be   :  { %p1123_p4 = pnand %p1122_p3, %p1116_p0 }
 0x321   :  { %v362_v28 = vpop.permute.xlu1 %361 }
 0x322   :  { %v360_v29 = vpop.permute.xlu0 %359  ;;  %v372_v34 = vsel %vm223_vm7, %v353_v27, %v362_v28 }
 0x323   :  { %v369_v32 = vsel %vm223_vm7, %v356_v30, %v360_v29 }
 0x325   :  { %v367_v31 = vpop.permute.xlu1 %366 }
 0x326   :  { %v365_v33 = vpop.permute.xlu0 %364  ;;  %v376_v36 = vsel %vm229_vm8, %v372_v34, %v367_v31  ;;  %v1105_v31 = vld [vmem:[%s1410_s1 + $0x140] sm:$0xff]  }
 0x327   :  { %v374_v35 = vsel %vm229_vm8, %v369_v32, %v365_v33 }
 0x328   :  { %1016 = vmatprep.mubr.msk.bf16.mxu1 %vm275_vm9, %v374_v35 }
 0x329   :  { %1017 = vmatmul.mubr.msk.bf16.vlgmr.msra.gmra.mrb[4].mxu1 %vm275_vm9, %v376_v36  ;;  %v649_v29 = vpop.permute.xlu1 %648 }
 0x32a   :  { %1021 = vmatpush3.bf16.msra.mxu1 %v1100_v1  ;;  %1030 = vmatprep.mubr.msk.bf16.mxu1 %vm1147_vm13, %v1144_v4 }
 0x32b   :  { %1022 = vmatprep.subr.bf16.mxu1 %v1144_v4 }
 0x32e   :  { %1023 = vmatpush3.bf16.msra.mxu1 %v1101_v6 }
 0x32f   :  { %1024 = vmatprep.subr.bf16.mxu1 %v1144_v4 }
 0x332   :  { %1025 = vmatpush3.bf16.msra.mxu1 %v1102_v0 }
 0x333   :  { %1026 = vmatprep.subr.bf16.mxu1 %v1144_v4 }
 0x336   :  { %1027 = vmatpush3.bf16.msra.mxu1 %v1103_v12 }
 0x337   :  { %1028 = vmatprep.subr.bf16.mxu1 %v1144_v4 }
 0x33a   :  { %1029 = vmatpush3.bf16.msra.mxu1 %v699_v17 }
 0x33b   :  { %1034 = vmatprep.subr.bf16.mxu1 %v1144_v4 }
 0x3fc   :  { %v1018_v53 = vpop.f32.mrb[4].mxu1 }
 0x3fd   :  { %v465_v54 = vadd.f32 %v1018_v53, %v381_v52  ;;  %v456_v55 = vpop.f32.mrb[5].mxu1 }
 0x3fe   :  { %v457_v56 = vadd.f32 %v456_v55, %v381_v52  ;;  %v1019_v57 = vpop.f32.mrb[6].mxu1 }
 0x3ff   :  { %v468_v58 = vadd.f32 %v1019_v57, %v381_v52  ;;  %v459_v59 = vpop.f32.mrb[7].mxu1  ;;  %v473_v61 = vmax.f32 %v465_v54, 0.0 }
 0x400   :  { %v460_v60 = vadd.f32 %v459_v59, %v381_v52  ;;  %v471_v2 = vmax.f32 %v457_v56, 0.0  ;;  %v764_v52 = vrot.slane %v760_v51, %v1252_v7 }
 0x401   :  { %v474_v62 = vmax.f32 %v468_v58, 0.0 }
 0x402   :  { %v472_v3 = vmax.f32 %v460_v60, 0.0 }
 0x403   :  { %v476_v5 = vpack.c.bf16 %v474_v62, %v473_v61 }
 0x404   :  { %v475_v8 = vpack.c.bf16 %v472_v3, %v471_v2 }
 0x405   :  { %909 = vmatprep.mubr.msk.bf16.mxu0 %vm229_vm8, %v476_v5 }
 0x406   :  { %504 = vrot.lane.b32.xlu0 %v475_v8, %s1142_s17 }
 0x40a   :  { %506 = vrot.lane.b32.xlu0 %v476_v5, %s1142_s17 }
 0x478   :  { %v505_v9 = vpop.permute.xlu0 %504 }
 0x479   :  { %911 = vmatmul.mubr.msk.bf16.vlgmr.msra.gmra.mrb[4].mxu0 %vm910_vm11, %v505_v9 }
 0x47a   :  { %637 = vmatprep.mubr.bf16.mxu0 %v1143_v38  ;;  %v1107_v38 = vld [vmem:[%s1410_s1 + $0x150] sm:$0xff]  }
 0x47c   :  { %v507_v10 = vpop.permute.xlu0 %506 }
 0x47d   :  { %v513_v11 = vsel %vm229_vm8, %v475_v8, %v507_v10 }
 0x481   :  { %638 = vmatmul.mubr.bf16.gmra.mrb[8].mxu0 %v513_v11 }
 0x54c   :  { %v631_v21 = vpop.f32.mrb[4].mxu0 }
 0x54d   :  { %v632_v22 = vadd.f32 %v631_v21, %v519_v20  ;;  %v633_v23 = vpop.f32.mrb[5].mxu0 }
 0x54e   :  { %v634_v24 = vpop.f32.mrb[6].mxu0 }
 0x54f   :  { %v635_v25 = vadd.f32 %v634_v24, %v519_v20  ;;  %v636_v26 = vpop.f32.mrb[7].mxu0  ;;  %v644_v27 = vmax.f32 %v632_v22, 0.0 }
 0x551   :  { %v645_v28 = vmax.f32 %v635_v25, 0.0 }
 0x553   :  { %v646_v30 = vpack.c.bf16 %v645_v28, %v644_v27 }
 0x554   :  { %v639_v32 = vpop.f32.mrb[8].mxu0 }
 0x555   :  { %v652_v33 = vsel %vm229_vm8, %v646_v30, %v649_v29  ;;  %v640_v34 = vpop.f32.mrb[9].mxu0 }
 0x556   :  { %v641_v35 = vpop.f32.mrb[10].mxu0  ;;  %1031 = vmatmul.mubr.msk.bf16.vlgmr.msra.gmra.mrb[8].mxu1 %vm692_vm14, %v652_v33 }
 0x557   :  { %v642_v36 = vpop.f32.mrb[11].mxu0  ;;  %1035 = vmatpush3.bf16.msra.mxu1 %v1105_v31  ;;  %1050 = vmatprep.mubr.msk.bf16.mxu1 %vm1147_vm13, %v1144_v4 }
 0x558   :  { %1036 = vmatprep.subr.bf16.mxu1 %v1144_v4 }
 0x55b   :  { %1037 = vmatpush3.bf16.msra.mxu1 %v1106_v37 }
 0x55c   :  { %1038 = vmatprep.subr.bf16.mxu1 %v1144_v4 }
 0x55f   :  { %1039 = vmatpush3.bf16.msra.mxu1 %v1107_v38 }
 0x560   :  { %1040 = vmatprep.subr.bf16.mxu1 %v1144_v4 }
 0x563   :  { %1041 = vmatpush3.bf16.msra.mxu1 %v1108_v39 }
 0x564   :  { %1042 = vmatprep.subr.bf16.mxu1 %v1144_v4 }
 0x567   :  { %1043 = vmatpush3.bf16.msra.mxu1 %v1109_v40 }
 0x568   :  { %1044 = vmatprep.subr.bf16.mxu1 %v1144_v4 }
 0x56b   :  { %1045 = vmatpush3.bf16.msra.mxu1 %v1110_v41 }
 0x56c   :  { %1046 = vmatprep.subr.bf16.mxu1 %v1144_v4 }
 0x56f   :  { %1047 = vmatpush3.bf16.msra.mxu1 %v1111_v42 }
 0x570   :  { %1048 = vmatprep.subr.bf16.mxu1 %v1144_v4 }
 0x573   :  { %1049 = vmatpush3.bf16.msra.mxu1 %v1112_v43 }
 0x629   :  { %v735_v44 = vpop.f32.mrb[8].mxu1 }
 0x62a   :  { %1113 = vtanh.f32 %v735_v44  ;;  %v1032_v45 = vpop.f32.mrb[9].mxu1 }
 0x62b   :  { %v738_v46 = vpop.f32.mrb[10].mxu1 }
 0x62c   :  { %v1033_v47 = vpop.f32.mrb[11].mxu1 }
 0x634   :  { %v1114_v48 = vpop.eup %1113 }
 0x635   :  { %v742_v49 = vpack.c.bf16 %v1114_v48, %v1114_v48 }
 0x637   :  { %1051 = vmatmul.mubr.bf16.vlgmr.msra.gmra.mrb[12].mxu1 %v742_v49 }
 0x70a   :  { %v847_v53 = vpop.f32.mrb[12].mxu1 }
 0x70b   :  { %v848_v54 = vadd.f32 %v847_v53, %v764_v52  ;;  %v1052_v55 = vpop.f32.mrb[13].mxu1 }
 0x70c   :  { %v850_v56 = vpop.f32.mrb[14].mxu1 }
 0x70d   :  { %v1053_v57 = vpop.f32.mrb[15].mxu1  ;;  %854 = vst.msk [vmem:[#allocation2] sm:$0x3] %vm853_vm15, %v848_v54 }
 0x70e   :  { %1126 = shalt.err (!%p1123_p4)
}
 0x70f   :  { %s1127_s7 = scalar_lea.hbm %s1411_s2, 32 }
 0x710   :  { %p1128_p5 = scmp.ne.s32.totalorder %s1411_s2, %s1127_s7  ;;  %p1131_p6 = scmp.lt.u32.totalorder %s1127_s7, %s1411_s2 }
 0x712   :  { %p1133_p7 = pnand %p1131_p6, %p1128_p5 }
 0x714   :  { %1136 = shalt.err (!%p1133_p7)
}
 0x715   :  { %864 = dma.vmem_to_hbm [thread:$0]  %s862_s4, 32, %s1411_s2, [#allocation3]  }
 0x716   :  { %1137 = dma.done.wait [#allocation3], 32  }
 0x717   :  { %1138 = vsyncadd [#allocation3], 4294967264 }
 0x718   :  { %868 = vsyncpa [#allocation3], 1 }

</bundles_post_ra>
